<compile_context>
chip_gen: v6e
topology: v6e:2x2x1
jax: 0.10.0
libtpu: 0.0.40
codegen_flags: <defaults>
</compile_context>

<pallas_src>
import functools

import jax
import jax.numpy as jnp
from jax.experimental import pallas as pl
from jax.experimental.pallas import tpu as pltpu


def _round_up(x, m):
    return (x + m - 1) // m * m


def _divisor_tile(dim, requested, preferred_mult=256):
    """Largest tile <= max(requested, 128) that divides `dim`, preferring
    256-multiples (full-width MXU pushes on v6e/v7x), else 128-multiples.
    Returns None if dim is not a multiple of 128."""
    if dim % 128 != 0:
        return None
    req = max(requested, 128)
    for mult in (preferred_mult, 128):
        t = (min(req, dim) // mult) * mult
        while t >= mult:
            if dim % t == 0:
                return t
            t -= mult
    return 128  # unreachable when dim % 128 == 0


def _device_defaults():
    kind = ""
    try:
        kind = jax.devices()[0].device_kind.lower()
    except Exception:  # pragma: no cover
        pass
    if "v7" in kind:
        # 64 MiB VMEM per TC: keep the double-buffered working set modest.
        return kind, 512, 512, 1024, 48 * 1024 * 1024
    if "v6" in kind:
        # Worst compute/BW ratio -> most aggressive tiles, big VMEM budget.
        return kind, 1024, 512, 1024, 96 * 1024 * 1024
    if "v5" in kind:
        return kind, 512, 512, 512, 96 * 1024 * 1024
    return kind, 512, 512, 512, 48 * 1024 * 1024


def _apply_activation(gate, activation):
    if activation == "gelu_tanh":
        return jax.nn.gelu(gate, approximate=True)
    if activation == "gelu":
        return jax.nn.gelu(gate, approximate=False)
    if activation in ("silu", "swish"):
        return jax.nn.silu(gate)
    if activation == "sigmoid":
        return jax.nn.sigmoid(gate)
    if activation == "relu":
        return jax.nn.relu(gate)
    raise ValueError(f"unsupported activation: {activation}")


def _glu_kernel(x_ref, wx_ref, wg_ref, bx_ref, bg_ref, o_ref,
                acc_v_ref, acc_g_ref, *, activation):
    # x_ref:  (tm, tk)  tile of flattened input rows
    # wx_ref: (tk, tn)  "value" half block of the fused projection weight
    # wg_ref: (tk, tn)  "gate"  half block of the fused projection weight
    # bx_ref/bg_ref: (1, tn) bias blocks
    # o_ref:  (tm, tn)  output tile
    # acc_*:  (tm, tn)  float32 accumulators (persist across the K grid axis)
    k = pl.program_id(2)

    @pl.when(k == 0)
    def _():
        # Seed the accumulators with the broadcast bias (same store cost as a
        # zero-init, removes two adds from the epilogue).
        acc_v_ref[...] = jnp.broadcast_to(
            bx_ref[...].astype(jnp.float32), acc_v_ref.shape)
        acc_g_ref[...] = jnp.broadcast_to(
            bg_ref[...].astype(jnp.float32), acc_g_ref.shape)

    x = x_ref[...]
    # Two back-to-back MXU passes over the same LHS tile (value & gate halves).
    acc_v_ref[...] += jnp.dot(x, wx_ref[...], preferred_element_type=jnp.float32)
    acc_g_ref[...] += jnp.dot(x, wg_ref[...], preferred_element_type=jnp.float32)

    @pl.when(k == pl.num_programs(2) - 1)
    def _():
        out = acc_v_ref[...] * _apply_activation(acc_g_ref[...], activation)
        o_ref[...] = out.astype(o_ref.dtype)


@functools.partial(jax.jit, static_argnames=("tm", "tn", "tk", "activation"))
def glu_forward(x, w, b, *, tm=None, tn=None, tk=None, activation="gelu_tanh"):
    """x: [..., dim_in]; w: (dim_in, 2*dim_out); b: (2*dim_out,)."""
    *lead, dim_in = x.shape
    dim_out = w.shape[1] // 2

    m = 1
    for d in lead:
        m *= d
    x2 = x.reshape(m, dim_in)

    kind, tm_d, tn_d, tk_d, vmem_cap = _device_defaults()
    tm_req = tm_d if tm is None else tm
    tn_req = tn_d if tn is None else tn
    tk_req = tk_d if tk is None else tk

    # ---- M tiling: never pad M.  A ragged last block reads garbage rows that
    # only produce garbage output rows, which are never part of the result.
    sublane = {4: 8, 2: 16, 1: 32}.get(jnp.dtype(x.dtype).itemsize, 8)
    if m <= tm_req:
        tm = m                                        # single full-dim block
    else:
        tm = max((tm_req // sublane) * sublane, sublane)

    # ---- K tiling: K padding must be explicit zeros (reduction axis).
    if dim_in <= tk_req:
        tk, k_pad, k_pad_needed = dim_in, dim_in, False       # single K block
    else:
        t = _divisor_tile(dim_in, tk_req)
        if t is not None:
            tk, k_pad, k_pad_needed = t, dim_in, False
        else:
            tk = max((tk_req // 128) * 128, 128)
            k_pad, k_pad_needed = _round_up(dim_in, tk), True

    # ---- N tiling: prefer a 256/128-multiple tile that divides dim_out so the
    # fused weight can be read in place (no per-call split/pad copy).
    if dim_out % 128 == 0:
        tn, n_pad, fused_n = _divisor_tile(dim_out, tn_req), dim_out, True
    elif dim_out <= max(tn_req, 128):
        tn, n_pad, fused_n = dim_out, dim_out, False          # full-dim block
    else:
        tn = max((tn_req // 128) * 128, 128)
        n_pad, fused_n = _round_up(dim_out, tn), False

    fused = fused_n and not k_pad_needed

    # v7x megacore: keep >= 2 parallel M/N tiles so both TensorCores get work.
    if "v7" in kind and (n_pad // tn) == 1 and pl.cdiv(m, tm) == 1 and m >= 256:
        tm = _round_up(pl.cdiv(m, 2), sublane)

    if k_pad_needed:
        x2 = jnp.pad(x2, ((0, 0), (0, k_pad - dim_in)))

    if fused:
        # Aligned (real model widths): pass the fused weight twice -> same HBM
        # buffer, no copies.  The gate half lives at block-column offset
        # dim_out // tn inside the fused (dim_in, 2*dim_out) array (tn divides
        # dim_out by construction).
        wx_arr, wg_arr = w, w
        gate_blk_off = dim_out // tn
    else:
        # TODO(synk): for large non-128-aligned dim_out this split/pad should
        # be hoisted to parameter setup; here it only triggers for tiny or
        # unaligned shapes.
        wx_arr, wg_arr = w[:, :dim_out], w[:, dim_out:]
        if k_pad_needed or n_pad != dim_out:
            pads = ((0, k_pad - dim_in), (0, n_pad - dim_out))
            wx_arr = jnp.pad(wx_arr, pads)
            wg_arr = jnp.pad(wg_arr, pads)
        gate_blk_off = 0

    # Biases are tiny; always split (and pad N only if the weights were padded).
    bx = b[:dim_out].reshape(1, dim_out)
    bg = b[dim_out:].reshape(1, dim_out)
    if n_pad != dim_out:
        bx = jnp.pad(bx, ((0, 0), (0, n_pad - dim_out)))
        bg = jnp.pad(bg, ((0, 0), (0, n_pad - dim_out)))

    grid = (pl.cdiv(m, tm), n_pad // tn, k_pad // tk)

    # VMEM budget: double-buffered streams + two resident f32 accumulators.
    xb = jnp.dtype(x.dtype).itemsize
    wb = jnp.dtype(w.dtype).itemsize
    est = (2 * (tm * tk * xb + 2 * tk * tn * wb + 2 * tn * wb + tm * tn * xb)
           + 2 * tm * tn * 4)
    vmem_limit = min(vmem_cap, max(32 * 1024 * 1024, int(est * 1.5)))

    out = pl.pallas_call(
        functools.partial(_glu_kernel, activation=activation),
        out_shape=jax.ShapeDtypeStruct((m, n_pad), x.dtype),
        grid_spec=pltpu.PrefetchScalarGridSpec(
            num_scalar_prefetch=0,
            grid=grid,
            in_specs=[
                pl.BlockSpec((tm, tk), lambda i, j, k: (i, k)),
                pl.BlockSpec((tk, tn), lambda i, j, k: (k, j)),
                pl.BlockSpec((tk, tn), lambda i, j, k, o=gate_blk_off: (k, j + o)),
                pl.BlockSpec((1, tn), lambda i, j, k: (0, j)),
                pl.BlockSpec((1, tn), lambda i, j, k: (0, j)),
            ],
            out_specs=pl.BlockSpec((tm, tn), lambda i, j, k: (i, j)),
            scratch_shapes=[
                pltpu.VMEM((tm, tn), jnp.float32),
                pltpu.VMEM((tm, tn), jnp.float32),
            ],
        ),
        compiler_params=pltpu.CompilerParams(
            dimension_semantics=("parallel", "parallel", "arbitrary"),
            vmem_limit_bytes=vmem_limit,
        ),
    )(x2, wx_arr, wg_arr, bx, bg)

    if n_pad != dim_out:
        out = out[:, :dim_out]
    return out.reshape(*lead, dim_out)


def glu_reference(x, w, b, activation="gelu_tanh"):
    dim_out = w.shape[1] // 2
    proj = x @ w + b
    val, gate = proj[..., :dim_out], proj[..., dim_out:]
    return val * _apply_activation(gate, activation)


if __name__ == "__main__":
    def make_inputs(key, batch, seq, dim_in, dim_out, dtype):
        kx, kw, kb = jax.random.split(key, 3)
        x = jax.random.normal(kx, (batch, seq, dim_in), dtype=jnp.float32)
        # nn.Linear(dim_in, 2*dim_out): uniform(-1/sqrt(dim_in), 1/sqrt(dim_in)),
        # stored here transposed as (dim_in, 2*dim_out).
        bound = 1.0 / (dim_in ** 0.5)
        w = jax.random.uniform(kw, (dim_in, 2 * dim_out), minval=-bound,
                               maxval=bound, dtype=jnp.float32)
        b = jax.random.uniform(kb, (2 * dim_out,), minval=-bound,
                               maxval=bound, dtype=jnp.float32)
        return x.astype(dtype), w.astype(dtype), b.astype(dtype)

    # 1) Small shapes consistent with the module (split-weight, no-pad path).
    x, w, b = make_inputs(jax.random.PRNGKey(0), 2, 8, 32, 32, jnp.float32)
    out = jax.block_until_ready(glu_forward(x, w, b))
    ref = glu_reference(x, w, b)
    assert out.shape == (2, 8, 32), out.shape
    assert jnp.allclose(out, ref, atol=1e-5, rtol=1e-5), \
        float(jnp.max(jnp.abs(out - ref)))

    # 2) Tile-aligned shapes: fused-weight no-copy path + multi-block N and K.
    x, w, b = make_inputs(jax.random.PRNGKey(1), 2, 8, 256, 256, jnp.float32)
    out = jax.block_until_ready(glu_forward(x, w, b, tm=16, tn=128, tk=128))
    ref = glu_reference(x, w, b)
    assert jnp.allclose(out, ref, atol=1e-4, rtol=1e-4), \
        float(jnp.max(jnp.abs(out - ref)))

    # 3) bf16 inputs, float32 accumulation.
    xb, wb, bb = make_inputs(jax.random.PRNGKey(2), 2, 8, 256, 256, jnp.bfloat16)
    outb = jax.block_until_ready(glu_forward(xb, wb, bb, tm=16, tn=128, tk=128))
    refb = glu_reference(xb.astype(jnp.float32), wb.astype(jnp.float32),
                         bb.astype(jnp.float32))
    assert jnp.allclose(outb.astype(jnp.float32), refb, atol=5e-2, rtol=5e-2), \
        float(jnp.max(jnp.abs(outb.astype(jnp.float32) - refb)))

    # 4) Device-default (large) tiles on a moderately sized problem.
    xd, wd, bd = make_inputs(jax.random.PRNGKey(3), 4, 128, 1024, 1024,
                             jnp.bfloat16)
    outd = jax.block_until_ready(glu_forward(xd, wd, bd))
    refd = glu_reference(xd.astype(jnp.float32), wd.astype(jnp.float32),
                         bd.astype(jnp.float32))
    assert outd.shape == (4, 128, 1024), outd.shape
    assert jnp.allclose(outd.astype(jnp.float32), refd, atol=5e-2, rtol=5e-2), \
        float(jnp.max(jnp.abs(outd.astype(jnp.float32) - refd)))

    print("KERNEL_OK")
</pallas_src>

<mosaic_0001>
module attributes {stable_mosaic.version = 11 : i64} {
  func.func @_glu_kernel(%arg0: i32, %arg1: i32, %arg2: i32, %arg3: memref<16x32xf32, #tpu.memory_space<vmem>>, %arg4: memref<32x32xf32, #tpu.memory_space<vmem>>, %arg5: memref<32x32xf32, #tpu.memory_space<vmem>>, %arg6: memref<1x32xf32, #tpu.memory_space<vmem>>, %arg7: memref<1x32xf32, #tpu.memory_space<vmem>>, %arg8: memref<16x32xf32, #tpu.memory_space<vmem>>, %arg9: memref<16x32xf32, #tpu.memory_space<vmem>>, %arg10: memref<16x32xf32, #tpu.memory_space<vmem>>) attributes {dimension_semantics = [#tpu.dimension_semantics<parallel>, #tpu.dimension_semantics<parallel>, #tpu.dimension_semantics<arbitrary>], iteration_bounds = array<i64: 1, 1, 1>, scalar_prefetch = 0 : i64, scratch_operands = 2 : i64, tpu.core_type = #tpu.core_type<tc>, window_params = [{transform_indices = @transform_0, window_bounds = array<i64: 16, 32>}, {transform_indices = @transform_1, window_bounds = array<i64: 32, 32>}, {transform_indices = @transform_2, window_bounds = array<i64: 32, 32>}, {transform_indices = @transform_3, window_bounds = array<i64: 1, 32>}, {transform_indices = @transform_4, window_bounds = array<i64: 1, 32>}, {transform_indices = @transform_5, window_bounds = array<i64: 16, 32>}]} {
    %c0_i32 = arith.constant 0 : i32
    %0 = arith.cmpi eq, %arg2, %c0_i32 : i32
    %1 = arith.extui %0 : i1 to i32
    %c0_i32_0 = arith.constant 0 : i32
    %2 = arith.cmpi ne, %1, %c0_i32_0 : i32
    scf.if %2 {
      %c0_17 = arith.constant 0 : index
      %c0_18 = arith.constant 0 : index
      %17 = vector.load %arg6[%c0_17, %c0_18] : memref<1x32xf32, #tpu.memory_space<vmem>>, vector<1x32xf32>
      %18 = vector.shape_cast %17 : vector<1x32xf32> to vector<1x32xf32>
      %19 = vector.broadcast %18 : vector<1x32xf32> to vector<16x32xf32>
      %c0_19 = arith.constant 0 : index
      %c0_20 = arith.constant 0 : index
      %20 = vector.load %arg9[%c0_19, %c0_20] : memref<16x32xf32, #tpu.memory_space<vmem>>, vector<16x32xf32>
      tpu.vector_store %arg9[%c0_19, %c0_20], %19 {strides = array<i32>} : memref<16x32xf32, #tpu.memory_space<vmem>>, vector<16x32xf32>,
      %c0_21 = arith.constant 0 : index
      %c0_22 = arith.constant 0 : index
      %21 = vector.load %arg7[%c0_21, %c0_22] : memref<1x32xf32, #tpu.memory_space<vmem>>, vector<1x32xf32>
      %22 = vector.shape_cast %21 : vector<1x32xf32> to vector<1x32xf32>
      %23 = vector.broadcast %22 : vector<1x32xf32> to vector<16x32xf32>
      %c0_23 = arith.constant 0 : index
      %c0_24 = arith.constant 0 : index
      %24 = vector.load %arg10[%c0_23, %c0_24] : memref<16x32xf32, #tpu.memory_space<vmem>>, vector<16x32xf32>
      tpu.vector_store %arg10[%c0_23, %c0_24], %23 {strides = array<i32>} : memref<16x32xf32, #tpu.memory_space<vmem>>, vector<16x32xf32>,
    } else {
    }
    %c0 = arith.constant 0 : index
    %c0_1 = arith.constant 0 : index
    %3 = vector.load %arg3[%c0, %c0_1] : memref<16x32xf32, #tpu.memory_space<vmem>>, vector<16x32xf32>
    %c0_2 = arith.constant 0 : index
    %c0_3 = arith.constant 0 : index
    %4 = vector.load %arg9[%c0_2, %c0_3] : memref<16x32xf32, #tpu.memory_space<vmem>>, vector<16x32xf32>
    %c0_4 = arith.constant 0 : index
    %c0_5 = arith.constant 0 : index
    %5 = vector.load %arg4[%c0_4, %c0_5] : memref<32x32xf32, #tpu.memory_space<vmem>>, vector<32x32xf32>
    %cst = arith.constant dense<0.000000e+00> : vector<16x32xf32>
    %6 = tpu.matmul %3, %5, %cst {dimension_numbers = #tpu.dot_dimension_numbers<[1], [0], [0], [1], [0, 0, 1, 1], [], []>} : vector<16x32xf32>, vector<32x32xf32>, vector<16x32xf32> -> vector<16x32xf32>
    %7 = arith.addf %4, %6 : vector<16x32xf32>
    %c0_6 = arith.constant 0 : index
    %c0_7 = arith.constant 0 : index
    %8 = vector.load %arg9[%c0_6, %c0_7] : memref<16x32xf32, #tpu.memory_space<vmem>>, vector<16x32xf32>
    tpu.vector_store %arg9[%c0_6, %c0_7], %7 {strides = array<i32>} : memref<16x32xf32, #tpu.memory_space<vmem>>, vector<16x32xf32>,
    %c0_8 = arith.constant 0 : index
    %c0_9 = arith.constant 0 : index
    %9 = vector.load %arg10[%c0_8, %c0_9] : memref<16x32xf32, #tpu.memory_space<vmem>>, vector<16x32xf32>
    %c0_10 = arith.constant 0 : index
    %c0_11 = arith.constant 0 : index
    %10 = vector.load %arg5[%c0_10, %c0_11] : memref<32x32xf32, #tpu.memory_space<vmem>>, vector<32x32xf32>
    %cst_12 = arith.constant dense<0.000000e+00> : vector<16x32xf32>
    %11 = tpu.matmul %3, %10, %cst_12 {dimension_numbers = #tpu.dot_dimension_numbers<[1], [0], [0], [1], [0, 0, 1, 1], [], []>} : vector<16x32xf32>, vector<32x32xf32>, vector<16x32xf32> -> vector<16x32xf32>
    %12 = arith.addf %9, %11 : vector<16x32xf32>
    %c0_13 = arith.constant 0 : index
    %c0_14 = arith.constant 0 : index
    %13 = vector.load %arg10[%c0_13, %c0_14] : memref<16x32xf32, #tpu.memory_space<vmem>>, vector<16x32xf32>
    tpu.vector_store %arg10[%c0_13, %c0_14], %12 {strides = array<i32>} : memref<16x32xf32, #tpu.memory_space<vmem>>, vector<16x32xf32>,
    %c0_i32_15 = arith.constant 0 : i32
    %14 = arith.cmpi eq, %arg2, %c0_i32_15 : i32
    %15 = arith.extui %14 : i1 to i32
    %c0_i32_16 = arith.constant 0 : i32
    %16 = arith.cmpi ne, %15, %c0_i32_16 : i32
    scf.if %16 {
      %c0_17 = arith.constant 0 : index
      %c0_18 = arith.constant 0 : index
      %17 = vector.load %arg9[%c0_17, %c0_18] : memref<16x32xf32, #tpu.memory_space<vmem>>, vector<16x32xf32>
      %c0_19 = arith.constant 0 : index
      %c0_20 = arith.constant 0 : index
      %18 = vector.load %arg10[%c0_19, %c0_20] : memref<16x32xf32, #tpu.memory_space<vmem>>, vector<16x32xf32>
      %19 = arith.mulf %18, %18 : vector<16x32xf32>
      %20 = arith.mulf %18, %19 : vector<16x32xf32>
      %cst_21 = arith.constant 4.471500e-02 : f32
      %21 = vector.broadcast %cst_21 : f32 to vector<16x32xf32>
      %22 = arith.mulf %21, %20 : vector<16x32xf32>
      %23 = arith.addf %18, %22 : vector<16x32xf32>
      %cst_22 = arith.constant 0.797884583 : f32
      %24 = vector.broadcast %cst_22 : f32 to vector<16x32xf32>
      %25 = arith.mulf %24, %23 : vector<16x32xf32>
      %26 = math.tanh %25 : vector<16x32xf32>
      %cst_23 = arith.constant 1.000000e+00 : f32
      %27 = vector.broadcast %cst_23 : f32 to vector<16x32xf32>
      %28 = arith.addf %27, %26 : vector<16x32xf32>
      %cst_24 = arith.constant 5.000000e-01 : f32
      %29 = vector.broadcast %cst_24 : f32 to vector<16x32xf32>
      %30 = arith.mulf %29, %28 : vector<16x32xf32>
      %31 = arith.mulf %18, %30 : vector<16x32xf32>
      %32 = arith.mulf %17, %31 : vector<16x32xf32>
      %c0_25 = arith.constant 0 : index
      %c0_26 = arith.constant 0 : index
      %33 = vector.load %arg8[%c0_25, %c0_26] : memref<16x32xf32, #tpu.memory_space<vmem>>, vector<16x32xf32>
      tpu.vector_store %arg8[%c0_25, %c0_26], %32 {strides = array<i32>} : memref<16x32xf32, #tpu.memory_space<vmem>>, vector<16x32xf32>,
    } else {
    }
    return
  }
  func.func @transform_0(%arg0: i32, %arg1: i32, %arg2: i32) -> (i32, i32) {
    %c0_i32 = arith.constant 0 : i32
    return %arg0, %arg2 : i32, i32
  }
  func.func @transform_1(%arg0: i32, %arg1: i32, %arg2: i32) -> (i32, i32) {
    %c0_i32 = arith.constant 0 : i32
    return %arg2, %arg1 : i32, i32
  }
  func.func @transform_2(%arg0: i32, %arg1: i32, %arg2: i32) -> (i32, i32) {
    %c0_i32 = arith.constant 0 : i32
    %0 = arith.addi %arg1, %c0_i32 : i32
    %c0_i32_0 = arith.constant 0 : i32
    return %arg2, %0 : i32, i32
  }
  func.func @transform_3(%arg0: i32, %arg1: i32, %arg2: i32) -> (i32, i32) {
    %c0_i32 = arith.constant 0 : i32
    %c0_i32_0 = arith.constant 0 : i32
    return %c0_i32, %arg1 : i32, i32
  }
  func.func @transform_4(%arg0: i32, %arg1: i32, %arg2: i32) -> (i32, i32) {
    %c0_i32 = arith.constant 0 : i32
    %c0_i32_0 = arith.constant 0 : i32
    return %c0_i32, %arg1 : i32, i32
  }
  func.func @transform_5(%arg0: i32, %arg1: i32, %arg2: i32) -> (i32, i32) {
    %c0_i32 = arith.constant 0 : i32
    return %arg0, %arg1 : i32, i32
  }
}

</mosaic_0001>

<bundles_post_ra>
// kernel: glu_forward.1
= control target key start
LH: loop header
LB: loop body
LE: loop exit
PB: predicated region body
PF: predicated region fallthrough
CT: control target
= control target key end

     0   :  { %vm32_vm0 = vcmask 261120   ;;  %s423_s0 = inlined_call_operand.vmem [shape: f32[16,32], index: 0, kind: input, shape index: {}]   ;;  %s424_s1 = inlined_call_operand.vmem [shape: f32[32,32], index: 1, kind: input, shape index: {}]   ;;  %s425_s2 = inlined_call_operand.vmem [shape: f32[32,32], index: 2, kind: input, shape index: {}]   ;;  %s426_s3 = inlined_call_operand.vmem [shape: f32[1,32], index: 3, kind: input, shape index: {}]   ;;  %s427_s4 = inlined_call_operand.vmem [shape: f32[1,32], index: 4, kind: input, shape index: {}]   ;;  %s428_s5 = inlined_call_operand.hbm [shape: f32[16,32], index: 5, kind: output, shape index: {}]  }
   0x1   :  { %v143_v0 = vld [vmem:[%s425_s2 + $0x18] sm:$0xff]  ;;  %v142_v1 = vld [vmem:[%s425_s2 + $0x10] sm:$0xff]  ;;  %v44_v2 = vld [vmem:[%s423_s0] sm:$0xff] }
   0x2   :  { %297 = vmatprep.subr.mxu1 %v143_v0  ;;  %v141_v3 = vld [vmem:[%s425_s2 + $0x8] sm:$0xff]  ;;  %305 = vmatprep.mubr.msk.f32.mxu1 %vm32_vm0, %v44_v2  ;;  %v51_v4 = vld [vmem:[%s424_s1 + $0x18] sm:$0xff]  ;;  %v50_v5 = vld [vmem:[%s424_s1 + $0x10] sm:$0xff] }
   0x3   :  { %298 = vmatpush3.msra.mxu1 %v143_v0  ;;  %286 = vmatprep.subr.mxu0 %v51_v4  ;;  %v269_v6 = vld [vmem:[%s427_s4] ss:$0 sm:$0xff] }
   0x4   :  { %299 = vmatprep.subr.mxu1 %v142_v1 }
   0x5   :  { %10 = vsyncpa [#allocation5], 0  ;;  %300 = vmatpush3.msra.mxu1 %v142_v1  ;;  %v140_v7 = vld [vmem:[%s425_s2] sm:$0xff]  ;;  %287 = vmatpush3.msra.mxu0 %v51_v4  ;;  %v49_v8 = vld [vmem:[%s424_s1 + $0x8] sm:$0xff]  ;;  %43 = vst.msk [vmem:[#allocation3 + $0x8] sm:$0xff] %vm32_vm0, %v269_v6 }
   0x6   :  { %42 = vst.msk [vmem:[#allocation3] sm:$0xff] %vm32_vm0, %v269_v6  ;;  %301 = vmatprep.subr.mxu1 %v141_v3  ;;  %288 = vmatprep.subr.mxu0 %v50_v5  ;;  %v45_v9 = vld [vmem:[%s423_s0 + $0x8] sm:$0xff]  ;;  %v48_v10 = vld [vmem:[%s424_s1] sm:$0xff]  ;;  %s337_s0 = smov [#allocation4]  }
   0x7   :  { %302 = vmatpush3.msra.mxu1 %v141_v3  ;;  %289 = vmatpush3.msra.mxu0 %v50_v5  ;;  %v268_v11 = vld [vmem:[%s426_s3] ss:$0 sm:$0xff]  ;;  %s257_s1 = sshll.u32 %s337_s0, 4  ;;  %s258_s1 = int_to_ptr.vmem [resolvable:$true] %s257_s1 }
   0x8   :  { %303 = vmatprep.subr.mxu1 %v140_v7  ;;  %290 = vmatprep.subr.mxu0 %v49_v8  ;;  %34 = vst.msk [vmem:[#allocation2 + $0x8] sm:$0xff] %vm32_vm0, %v268_v11  ;;  %33 = vst.msk [vmem:[#allocation2] sm:$0xff] %vm32_vm0, %v268_v11  ;;  %s315_s3 = scalar_lea.vmem %s258_s1, 256  ;;  %p320_p1 = scmp.lt.s32.totalorder %s258_s1, %s258_s1 }
   0x9   :  { %304 = vmatpush3.msra.mxu1 %v140_v7  ;;  %291 = vmatpush3.msra.mxu0 %v49_v8  ;;  %p316_p0 = scmp.ne.s32.totalorder %s258_s1, %s315_s3  ;;  %p321_p2 = scmp.lt.s32.totalorder %s315_s3, %s315_s3 }
   0xa   :  { %306 = vmatmul.mubr.msk.f32.vlgmr.msra.gmra.mxu1 %vm32_vm0, %v45_v9  ;;  %292 = vmatprep.subr.mxu0 %v48_v10 }
   0xb   :  { %293 = vmatpush3.msra.mxu0 %v48_v10  ;;  %294 = vmatprep.mubr.msk.f32.mxu0 %vm32_vm0, %v44_v2  ;;  %p322_p3 = por %p321_p2, %p320_p1 }
   0xc   :  { %295 = vmatmul.mubr.msk.f32.vlgmr.msra.gmra.mxu0 %vm32_vm0, %v45_v9  ;;  %v139_v12 = vld [vmem:[#allocation3 + $0x8] sm:$0xff] }
   0xd   :  { %v138_v14 = vld [vmem:[#allocation3] sm:$0xff]  ;;  %p323_p4 = pnand %p322_p3, %p316_p0 }
   0xf   :  { %v47_v15 = vld [vmem:[#allocation2 + $0x8] sm:$0xff]  ;;  %v46_v19 = vld [vmem:[#allocation2] sm:$0xff] }
  0xca   :  { %v307_v13 = vpop.f32.mrf.mxu1 }
  0xcb   :  { %v220_v16 = vadd.f32 %v307_v13, %v139_v12 }
  0xcc   :  { %v210_v17 = vpop.f32.mrf.mxu1  ;;  %v296_v18 = vpop.f32.mrf.mxu0 }
  0xcd   :  { %222 = vst.msk [vmem:[#allocation3 + $0x8] sm:$0xff] %vm32_vm0, %v220_v16  ;;  %v219_v20 = vadd.f32 %v210_v17, %v138_v14  ;;  %v135_v21 = vadd.f32 %v296_v18, %v47_v15 }
  0xce   :  { %v125_v22 = vpop.f32.mrf.mxu0 }
  0xcf   :  { %221 = vst.msk [vmem:[#allocation3] sm:$0xff] %vm32_vm0, %v219_v20  ;;  %137 = vst.msk [vmem:[#allocation2 + $0x8] sm:$0xff] %vm32_vm0, %v135_v21  ;;  %v134_v23 = vadd.f32 %v125_v22, %v46_v19 }
  0xd1   :  { %136 = vst.msk [vmem:[#allocation2] sm:$0xff] %vm32_vm0, %v134_v23 }
  0xd4   :  { %v229_v24 = vld [vmem:[#allocation3 + $0x8] sm:$0xff] }
  0xd5   :  { %v231_v25 = vmul.f32 %v229_v24, %v229_v24 }
  0xd6   :  { %v228_v26 = vld [vmem:[#allocation3] sm:$0xff]  ;;  %v227_v41 = vld [vmem:[#allocation2 + $0x8] sm:$0xff] }
  0xd7   :  { %v230_v27 = vmul.f32 %v228_v26, %v228_v26  ;;  %v233_v28 = vmul.f32 %v231_v25, %v229_v24 }
  0xd8   :  { %v226_v46 = vld [vmem:[#allocation2] sm:$0xff] }
  0xd9   :  { %v232_v29 = vmul.f32 %v230_v27, %v228_v26  ;;  %v235_v30 = vmul.f32 0.044715, %v233_v28 }
  0xdb   :  { %v234_v31 = vmul.f32 0.044715, %v232_v29  ;;  %v237_v32 = vadd.f32 %v235_v30, %v229_v24 }
  0xdd   :  { %v236_v33 = vadd.f32 %v234_v31, %v228_v26  ;;  %v239_v34 = vmul.f32 0.7978846, %v237_v32 }
  0xdf   :  { %v238_v35 = vmul.f32 0.7978846, %v236_v33  ;;  %311 = vtanh.f32 %v239_v34 }
  0xe1   :  { %313 = vtanh.f32 %v238_v35 }
  0xec   :  { %v312_v36 = vpop.eup %311 }
  0xed   :  { %v243_v37 = vadd.f32 1.0, %v312_v36 }
  0xee   :  { %v314_v38 = vpop.eup %313 }
  0xef   :  { %v242_v39 = vadd.f32 1.0, %v314_v38  ;;  %v245_v40 = vmul.f32 0.5, %v243_v37 }
  0xf1   :  { %v244_v42 = vmul.f32 0.5, %v242_v39  ;;  %v247_v43 = vmul.f32 %v245_v40, %v229_v24 }
  0xf3   :  { %v246_v44 = vmul.f32 %v244_v42, %v228_v26  ;;  %v249_v45 = vmul.f32 %v247_v43, %v227_v41 }
  0xf5   :  { %v248_v47 = vmul.f32 %v246_v44, %v226_v46  ;;  %251 = vst.msk [vmem:[#allocation4 + $0x8] sm:$0xff] %vm32_vm0, %v249_v45 }
  0xf7   :  { %250 = vst.msk [vmem:[#allocation4] sm:$0xff] %vm32_vm0, %v248_v47 }
  0xf8   :  { %326 = shalt.err (!%p323_p4)
}
  0xf9   :  { %s338_s15 = smov 128   ;;  %s339_s16 = smov 8  }
  0xfa   :  { %263 = dma.vmem_to_hbm [thread:$0]  %s258_s1, 256, %s428_s5, [#allocation5], %s338_s15, %s338_s15, %s339_s16  }
  0xfb   :  { %335 = dma.done.wait [#allocation5], 256  }
  0xfc   :  { %336 = vsyncadd [#allocation5], 4294967040 }
  0xfd   :  { %267 = vsyncpa [#allocation5], 1 }

</bundles_post_ra>
